<compile_context>
chip_gen: v7x
topology: tpu7x:2x2x1
jax: 0.10.0
libtpu: 0.0.40
codegen_flags: <defaults>
</compile_context>

<pallas_src>
import functools

import jax
import jax.numpy as jnp
from jax import lax
from jax.experimental import pallas as pl
from jax.experimental.pallas import tpu as pltpu

# Module-level hyper-parameters (the PyTorch module reads these from globals).
GATE_EPS = 1e-6
GATE_HARD = False
GATE_PENALTY = 1.0
GATE_LOCAL_REP = False
GATE_TEMPERATURE = 0.33
GATE_STRETCH_LIMITS = (-0.1, 1.1)


# ---------------------------------------------------------------------------
# Counter-based PRNG (murmur-style finalizer) built only from int32 VPU ops.
# ---------------------------------------------------------------------------
def _i32(x):
    """Python int -> two's-complement int32-equivalent Python int."""
    x &= 0xFFFFFFFF
    return x - (1 << 32) if x >= (1 << 31) else x


_C_ROW = _i32(0x9E3779B1)
_C_COL = _i32(0x85EBCA6B)
_C_SEED = _i32(0xC2B2AE35)
_C_M1 = _i32(0x7FEB352D)
_C_M2 = _i32(0x846CA68B)


def _shr_logical(h, n):
    # Logical right-shift of int32 expressed as arithmetic shift + mask (n >= 1).
    return (h >> n) & ((1 << (32 - n)) - 1)


def _hash_uniform(row, col, seed):
    """Deterministic per-(row, col, seed) uniform float32 in [0, 1)."""
    h = row * _C_ROW + col * _C_COL
    h = h ^ (seed * _C_SEED)
    h = h ^ _shr_logical(h, 16)
    h = h * _C_M1
    h = h ^ _shr_logical(h, 15)
    h = h * _C_M2
    h = h ^ _shr_logical(h, 16)
    bits = _shr_logical(h, 9)                       # top 23 bits, non-negative int32
    return bits.astype(jnp.float32) * (1.0 / float(1 << 23))


# ---------------------------------------------------------------------------
# Kernels
# ---------------------------------------------------------------------------
def _gate_mul_kernel(x_ref, gates_ref, o_ref):
    # Eval path: gates (1, TH) precomputed in the wrapper -> broadcast multiply only.
    o_ref[...] = (x_ref[...].astype(jnp.float32) * gates_ref[...]).astype(o_ref.dtype)


def _gate_train_kernel(seed_ref, x_ref, log_a_ref, o_ref, *,
                       eps, inv_t, low, high, hard):
    # seed_ref: SMEM (1,) int32; x_ref: (TM, TH); log_a_ref: (1, TH) f32; o_ref: (TM, TH)
    tm, th = x_ref.shape
    seed = seed_ref[0]

    # Global element indices -> tile-size-independent random stream.
    row = lax.broadcasted_iota(jnp.int32, (tm, th), 0) + pl.program_id(0) * tm
    col = lax.broadcasted_iota(jnp.int32, (tm, th), 1) + pl.program_id(1) * th
    u = _hash_uniform(row, col, seed)                       # uniform in [0, 1)
    noise = eps + (1.0 - 2.0 * eps) * u                     # uniform in [eps, 1 - eps)

    z = (jnp.log(noise) - jnp.log(1.0 - noise) + log_a_ref[...]) * inv_t
    concrete = 0.5 * jnp.tanh(0.5 * z) + 0.5                # sigmoid via tanh: 1 EUP op
    gates = jnp.clip(concrete * (high - low) + low, 0.0, 1.0)
    if hard:
        gates = (gates > 0.5).astype(jnp.float32)           # forward value of ST hard gate
    o_ref[...] = (x_ref[...].astype(jnp.float32) * gates).astype(o_ref.dtype)


# ---------------------------------------------------------------------------
# Wrapper
# ---------------------------------------------------------------------------
def concrete_gate_forward(values, log_a, *, is_train=False, sum_dim=(0, 1),
                          eps=GATE_EPS, temperature=GATE_TEMPERATURE,
                          stretch_limits=GATE_STRETCH_LIMITS, hard=GATE_HARD,
                          l0_penalty=GATE_PENALTY, local_rep=GATE_LOCAL_REP,
                          seed=0, block_m=512, block_h=2048):
    """values: (B, S, H); log_a: (H,). Returns (gated_values, l0_penalty_scalar)."""
    low, high = stretch_limits
    B, S, H = values.shape
    M = B * S
    x2d = values.reshape(M, H)
    log_a_row = jnp.asarray(log_a, jnp.float32).reshape(1, H)

    itemsize = jnp.dtype(values.dtype).itemsize
    sub = max(8, 32 // itemsize)                 # dtype-native sublane multiple (f32:8, bf16:16, i8:32)

    # H tile: lane-dense multiple of 128, capped so the broadcast gate row stays small.
    if H % 128 == 0 and H > block_h:
        th = (block_h // 128) * 128
    else:
        th = H

    # M tile: multiple of the sublane count (or full extent).
    tm = min(int(block_m), M)
    if tm != M:
        tm = max((tm // sub) * sub, sub)
    # Keep >= 2 grid steps along M when possible so both v7x TensorCores get work.
    if pl.cdiv(M, tm) < 2 and M >= 2 * sub:
        tm = (((M + 1) // 2) + sub - 1) // sub * sub
    # Shrink tm until the double-buffered in/out tiles fit a ~40 MiB budget.
    budget = 40 << 20
    while 4 * tm * th * itemsize > budget and tm > sub:
        tm = max(((tm // 2) // sub) * sub, sub)

    grid = (pl.cdiv(M, tm), pl.cdiv(H, th))
    needed = 4 * tm * th * itemsize + 2 * th * 4       # 2x-buffered x/out tiles + gate row
    vmem_limit = int(min(max(needed + (4 << 20), 16 << 20), 48 << 20))

    if is_train:
        kernel = functools.partial(
            _gate_train_kernel, eps=float(eps), inv_t=float(1.0 / temperature),
            low=float(low), high=float(high), hard=bool(hard))
        num_sp = 1
        x_map = lambda i, j, s: (i, j)
        g_map = lambda i, j, s: (0, j)
        gate_in = log_a_row
        call_args = (jnp.asarray([seed], jnp.int32), x2d, gate_in)
    else:
        # Gates are O(H): precompute once, kernel is a pure broadcast multiply.
        gates = jnp.clip(jax.nn.sigmoid(log_a_row) * (high - low) + low, 0.0, 1.0)
        if hard:
            gates = (gates > 0.5).astype(jnp.float32)
        kernel = _gate_mul_kernel
        num_sp = 0
        x_map = lambda i, j: (i, j)
        g_map = lambda i, j: (0, j)
        call_args = (x2d, gates)

    out2d = pl.pallas_call(
        kernel,
        out_shape=jax.ShapeDtypeStruct((M, H), values.dtype),
        grid_spec=pltpu.PrefetchScalarGridSpec(
            num_scalar_prefetch=num_sp,
            grid=grid,
            in_specs=[
                pl.BlockSpec((tm, th), x_map),     # x tile
                pl.BlockSpec((1, th), g_map),      # log_a / gates row (resident per H-tile)
            ],
            out_specs=pl.BlockSpec((tm, th), x_map),
        ),
        compiler_params=pltpu.CompilerParams(
            dimension_semantics=("parallel", "parallel"),
            vmem_limit_bytes=vmem_limit,
        ),
    )(*call_args)

    gated = out2d.reshape(B, S, H)

    # L0 penalty: scalar O(H) reduction over log_a — plain JAX, not worth a kernel.
    p_open = jax.nn.sigmoid(log_a_row.reshape(-1) - temperature * jnp.log(-low / high))
    p_open = jnp.clip(p_open, eps, 1.0 - eps)
    if local_rep:
        p_b = jnp.broadcast_to(p_open.reshape(1, 1, H), values.shape)
        penalty = l0_penalty * jnp.mean(jnp.sum(p_b, axis=sum_dim))
    else:
        penalty = l0_penalty * jnp.sum(p_open)

    return gated, penalty


def _train_reference(values, log_a, seed, eps, temperature, low, high, hard):
    """Plain-JAX reference of the training path (same counter-based noise)."""
    B, S, H = values.shape
    M = B * S
    row = lax.broadcasted_iota(jnp.int32, (M, H), 0)
    col = lax.broadcasted_iota(jnp.int32, (M, H), 1)
    u = _hash_uniform(row, col, jnp.int32(seed))
    noise = eps + (1.0 - 2.0 * eps) * u
    z = (jnp.log(noise) - jnp.log(1.0 - noise) + jnp.asarray(log_a, jnp.float32).reshape(1, H)) / temperature
    gates = jnp.clip(jax.nn.sigmoid(z) * (high - low) + low, 0.0, 1.0)
    if hard:
        gates = (gates > 0.5).astype(jnp.float32)
    return (values.reshape(M, H).astype(jnp.float32) * gates).astype(values.dtype).reshape(B, S, H)


if __name__ == "__main__":
    # Small shapes: batch=2, seq=8, hidden=128 (H multiple of 128 -> lane-dense stores).
    B, S, H = 2, 8, 128
    key = jax.random.PRNGKey(0)
    kx, ka = jax.random.split(key)
    x = jax.random.normal(kx, (B, S, H), dtype=jnp.float32)
    log_a = 0.5 * jax.random.normal(ka, (H,), dtype=jnp.float32)

    low, high = GATE_STRETCH_LIMITS

    # --- eval (deterministic) path; block_m=8 forces a 2-step tiled grid even at toy size.
    out, penalty = concrete_gate_forward(x, log_a, is_train=False, sum_dim=(0, 1), block_m=8)
    jax.block_until_ready(out)

    gates_ref = jnp.clip(jax.nn.sigmoid(log_a) * (high - low) + low, 0.0, 1.0)
    ref = x * gates_ref
    assert out.shape == (B, S, H)
    assert jnp.allclose(out, ref, atol=1e-5, rtol=1e-5)

    p_open_ref = jnp.clip(
        jax.nn.sigmoid(log_a - GATE_TEMPERATURE * jnp.log(-low / high)),
        GATE_EPS, 1.0 - GATE_EPS)
    assert jnp.allclose(penalty, GATE_PENALTY * jnp.sum(p_open_ref), atol=1e-4, rtol=1e-5)

    # --- hard-gate eval path.
    out_hard, _ = concrete_gate_forward(x, log_a, is_train=False, hard=True)
    jax.block_until_ready(out_hard)
    ref_hard = x * (gates_ref > 0.5).astype(jnp.float32)
    assert jnp.allclose(out_hard, ref_hard, atol=1e-5, rtol=1e-5)

    # --- training (stochastic noisy-concrete) path: deterministic hash noise, exact reference.
    out_tr, _ = concrete_gate_forward(x, log_a, is_train=True, seed=123, block_m=8)
    jax.block_until_ready(out_tr)
    ref_tr = _train_reference(x, log_a, 123, GATE_EPS, GATE_TEMPERATURE, low, high, False)
    assert out_tr.shape == (B, S, H)
    assert bool(jnp.all(jnp.isfinite(out_tr)))
    assert jnp.allclose(out_tr, ref_tr, atol=1e-4, rtol=1e-4)
    assert bool(jnp.all(jnp.abs(out_tr) <= jnp.abs(x) + 1e-5))

    print("KERNEL_OK")
</pallas_src>

<mosaic_0001>
module attributes {stable_mosaic.version = 11 : i64} {
  func.func @_gate_mul_kernel(%arg0: i32, %arg1: i32, %arg2: memref<8x128xf32, #tpu.memory_space<vmem>>, %arg3: memref<1x128xf32, #tpu.memory_space<vmem>>, %arg4: memref<8x128xf32, #tpu.memory_space<vmem>>) attributes {dimension_semantics = [#tpu.dimension_semantics<parallel>, #tpu.dimension_semantics<parallel>], iteration_bounds = array<i64: 2, 1>, scalar_prefetch = 0 : i64, scratch_operands = 0 : i64, tpu.core_type = #tpu.core_type<tc>, window_params = [{transform_indices = @transform_0, window_bounds = array<i64: 8, 128>}, {transform_indices = @transform_1, window_bounds = array<i64: 1, 128>}, {transform_indices = @transform_2, window_bounds = array<i64: 8, 128>}]} {
    %c0 = arith.constant 0 : index
    %c0_0 = arith.constant 0 : index
    %0 = vector.load %arg2[%c0, %c0_0] : memref<8x128xf32, #tpu.memory_space<vmem>>, vector<8x128xf32>
    %c0_1 = arith.constant 0 : index
    %c0_2 = arith.constant 0 : index
    %1 = vector.load %arg3[%c0_1, %c0_2] : memref<1x128xf32, #tpu.memory_space<vmem>>, vector<1x128xf32>
    %2 = vector.broadcast %1 : vector<1x128xf32> to vector<8x128xf32>
    %3 = arith.mulf %0, %2 : vector<8x128xf32>
    %c0_3 = arith.constant 0 : index
    %c0_4 = arith.constant 0 : index
    %4 = vector.load %arg4[%c0_3, %c0_4] : memref<8x128xf32, #tpu.memory_space<vmem>>, vector<8x128xf32>
    tpu.vector_store %arg4[%c0_3, %c0_4], %3 {strides = array<i32>} : memref<8x128xf32, #tpu.memory_space<vmem>>, vector<8x128xf32>,
    return
  }
  func.func @transform_0(%arg0: i32, %arg1: i32) -> (i32, i32) {
    %c0_i32 = arith.constant 0 : i32
    return %arg0, %arg1 : i32, i32
  }
  func.func @transform_1(%arg0: i32, %arg1: i32) -> (i32, i32) {
    %c0_i32 = arith.constant 0 : i32
    %c0_i32_0 = arith.constant 0 : i32
    return %c0_i32, %arg1 : i32, i32
  }
  func.func @transform_2(%arg0: i32, %arg1: i32) -> (i32, i32) {
    %c0_i32 = arith.constant 0 : i32
    return %arg0, %arg1 : i32, i32
  }
}

</mosaic_0001>

<bundles_post_ra>
// kernel: tpu_custom_call.1
= control target key start
LH: loop header
LB: loop body
LE: loop exit
PB: predicated region body
PF: predicated region fallthrough
CT: control target
= control target key end

     0   :  { %7 = vsyncpa [#allocation3], 0  ;;  %s690_s0 = inlined_call_operand.hbm [shape: f32[16,128], index: 0, kind: input, shape index: {}]   ;;  %s691_s1 = inlined_call_operand.vmem [shape: f32[1,128], index: 1, kind: input, shape index: {}]   ;;  %s692_s2 = inlined_call_operand.hbm [shape: f32[16,128], index: 2, kind: output, shape index: {}]  }
   0x1   :  { %9 = vsyncpa [#allocation3 + $0x1], 0 }
   0x2   :  { %10 = vsyncpa [#allocation4], 0 }
   0x3   :  { %12 = vsyncpa [#allocation4 + $0x1], 0  ;;  %s515_s9 = smov 0   ;;  %s517_s10 = smov 0  }
   0x4   :  { %s519_s11 = smov 0   ;;  %s521_s12 = smov 0  }
   0x5   :  { %s523_s13 = smov 0   ;;  %s525_s14 = smov 0  }
   0x6 LB: > { %s307_s15 = sadd.s32 4294967295, %s496_s14   ;;  %s308_s16 = sadd.s32 4294967294, %s496_s14   ;;  %s496_s14 = sphi %s525_s14, %s18_s14   ;;  %s492_s13 = sphi %s523_s13, %s708_s13   ;;  %s488_s12 = sphi %s521_s12, %s707_s12   ;;  %s484_s11 = sphi %s519_s11, %s706_s11   ;;  %s480_s10 = sphi %s517_s10, %s705_s10   ;;  %s476_s9 = sphi %s515_s9, %s704_s9  }
   0x7   : > { %s30_s17 = sadd.s32 1, %s492_s13  ;;  %s39_s18 = sadd.s32 1, %s484_s11 }
   0x8   : > { %p32_p0 = scmp.ge.s32.totalorder %s30_s17, 2  ;;  %p46_p1 = scmp.ne.s32.totalorder %s484_s11, %s480_s10 }
   0x9   : > { %p47_p2 = scmp.eq.s32.totalorder %s496_s14, 0  ;;  %p52_p3 = scmp.ne.s32.totalorder %s480_s10, %s476_s9 }
   0xa   : > { %s710_s17 = smov (%p32_p0, %s30_s17), 0  ;;  %p53_p5 = scmp.eq.s32.totalorder %s307_s15, 0 }
   0xb   : > { %p556_p4 = por %p47_p2, %p46_p1  ;;  %s34_s20 = ssub.s32 %s492_s13, %s710_s17 }
   0xc   : > { %p104_p6 = scmp.eq.s32.totalorder %s307_s15, 1  ;;  %p37_p7 = scmp.eq.s32.totalorder %s34_s20, 0 }
   0xd   : > { %p562_p8 = por %p53_p5, %p52_p3  ;;  %p110_p10 = scmp.eq.s32.totalorder %s308_s16, 1 }
   0xe   : > { %p566_p9 = por %p104_p6, %p46_p1  ;;  %p334_p13 = scmp.lt.s32.totalorder %s496_s14, 2 }
   0xf   : > { %s571_s23 = scalar_select %p37_p7, %s484_s11, %s39_s18  }
  0x10   : > { %s696_s22 = scalar_select %p566_p9, 1, 0 }
  0x11   : > { %p573_p11 = por %p110_p10, %p52_p3  ;;  %s136_s25 = sand.u32 1, %s484_s11  }
  0x12   : > { %s312_s26 = sshll.u32 %s136_s25, 3  ;;  %s313_s27 = sshll.u32 %s492_s13, 7 }
  0x13   : > { %s697_s24 = scalar_select %p573_p11, 1, 0 }
  0x14   : > { %s584_s30 = scalar_lea.hbm %s690_s0, %s313_s27  ;;  %s140_s3 = scalar_lea.vmem [#allocation2], %s312_s26 }
  0x15   : > { %s148_s4 = sshll.u32 %s140_s3, 4  ;;  %p590_p0 = pnand %p334_p13, %p556_p4  ;;  %s586_s4 = int_to_ptr.vmem [resolvable:$true] %s148_s4 }
  0x16   : > { %s137_s6 = scalar_lea.sflag [#allocation3], %s136_s25  ;;  %s384_s7 = scalar_lea.hbm %s584_s30, 128 }
  0x17   : > { %p385_p3 = scmp.ne.s32.totalorder %s584_s30, %s384_s7  ;;  %p386_p5 = pneg %p590_p0 }
  0x18   : > { %s389_s16 = scalar_lea.hbm %s690_s0, 256  ;;  %p390_p4 = scmp.lt.u32.totalorder %s584_s30, %s690_s0 }
  0x19   : > { %p387_p6 = pnand %p386_p5, %p385_p3  ;;  %p391_p10 = scmp.lt.u32.totalorder %s389_s16, %s384_s7 }
  0x1a   : > { %p393_p12 = scmp.lt.u32.totalorder %s384_s7, %s584_s30 }
  0x1b   : > { %p388_p7 = pneg %p387_p6  ;;  %p392_p13 = por %p391_p10, %p390_p4 }
  0x1d   : > { %p394_p1 = por %p393_p12, %p392_p13 }
  0x1f   : > { %p395_p2 = pnand %p394_p1, %p388_p7 }
  0x21   : > { %398 = shalt.err (!%p395_p2)
}
  0x22   : > { %s399_s20 = scalar_lea.vmem %s586_s4, 128  ;;  %s498_s25 = smov [#allocation2]  }
  0x23   : > { %p400_p3 = scmp.ne.s32.totalorder %s586_s4, %s399_s20  ;;  %s404_s26 = sshll.u32 %s498_s25, 4  ;;  %s405_s26 = int_to_ptr.vmem [resolvable:$false] %s404_s26 }
  0x24   : > { %s406_s27 = scalar_lea.vmem %s405_s26, 256  ;;  %p407_p9 = scmp.lt.s32.totalorder %s586_s4, %s405_s26 }
  0x25   : > { %p402_p6 = pnand %p400_p3, %p386_p5  ;;  %p408_p4 = scmp.lt.s32.totalorder %s406_s27, %s399_s20 }
  0x27   : > { %p403_p11 = pneg %p402_p6  ;;  %p409_p10 = por %p408_p4, %p407_p9 }
  0x29   : > { %p410_p12 = pnand %p409_p10, %p403_p11 }
  0x2b   : > { %413 = shalt.err (!%p410_p12)
}
  0x2c   : > { %329 = dma.hbm_to_vmem [thread:$0]  (!%p590_p0), %s584_s30, 128, %s586_s4, %s137_s6  }
  0x2d   : > { %p699_p1 = scmp.lt.s32.totalorder %s496_s14, 3  ;;  %p700_p2 = scmp.ge.s32.totalorder %s496_s14, 1 }
  0x2f   : > { %p154_p5 = pnand %p700_p2, %p699_p1 }
  0x30   : > { %s626_s28 = sand.u32 (!%p154_p5), 1, %s480_s10  }
  0x31   : > { %157 = sbr.rel (%p154_p5) target bundleno = 83 (0x53), region = 28  ;;  %s315_s29 = sshll.u32 (!%p154_p5), %s626_s28, 3 }
  0x32   : > { %s160_s3 = scalar_lea.sflag (!%p154_p5), [#allocation3], %s626_s28  ;;  %s163_s7 = scalar_lea.vmem (!%p154_p5), [#allocation2], %s315_s29 }
  0x38   : > { %467 = dma.done.wait (%p562_p8), %s160_s3, 128  }
  0x39   : > { %469 = vsyncadd (%p562_p8), %s160_s3, 4294967168  ;;  %s186_s30 = scalar_lea.vmem [#allocation5], %s315_s29  ;;  %s319_s5 = sshll.u32 %s488_s12, 7  ;;  %v190_v0 = vld [vmem:[%s163_s7] sm:$0xff] }
  0x3a   : > { %s215_s4 = sshll.u32 %s186_s30, 4  ;;  %v317_v1 = vld [vmem:[%s691_s1] ss:$0 sm:$0xff]  ;;  %s643_s21 = scalar_lea.hbm %s692_s2, %s319_s5  ;;  %s638_s4 = int_to_ptr.vmem [resolvable:$true] %s215_s4 }
  0x3b   : > { %v198_v2 = vmul.f32 %v317_v1, %v190_v0  ;;  %s201_s18 = scalar_lea.sflag [#allocation4], %s626_s28  ;;  %s414_s19 = scalar_lea.vmem %s638_s4, 128 }
  0x3c   : > { %p415_p8 = scmp.ne.s32.totalorder %s638_s4, %s414_s19  ;;  %p701_p9 = scmp.ne.s32.totalorder %s696_s22, 0 }
  0x3d   : > { %199 = vst [vmem:[%s186_s30] sm:$0xff] %v198_v2  ;;  %s499_s12 = smov [#allocation5]  }
  0x3e   : > { %p416_p11 = pnand %p415_p8, %p701_p9  ;;  %s418_s20 = sshll.u32 %s499_s12, 4  ;;  %s419_s20 = int_to_ptr.vmem [resolvable:$false] %s418_s20 }
  0x3f   : > { %s420_s25 = scalar_lea.vmem %s419_s20, 256  ;;  %p421_p7 = scmp.lt.s32.totalorder %s638_s4, %s419_s20 }
  0x40   : > { %p417_p0 = pneg %p416_p11  ;;  %p422_p13 = scmp.lt.s32.totalorder %s420_s25, %s414_s19 }
  0x42   : > { %p423_p3 = por %p422_p13, %p421_p7 }
  0x44   : > { %p424_p6 = pnand %p423_p3, %p417_p0 }
  0x46   : > { %427 = shalt.err (!%p424_p6)
}
  0x47   : > { %s428_s26 = scalar_lea.hbm %s643_s21, 128  ;;  %s432_s29 = scalar_lea.hbm %s692_s2, 256 }
  0x48   : > { %p429_p4 = scmp.ne.s32.totalorder %s643_s21, %s428_s26  ;;  %p433_p1 = scmp.lt.u32.totalorder %s643_s21, %s692_s2 }
  0x49   : > { %p434_p2 = scmp.lt.u32.totalorder %s432_s29, %s428_s26  ;;  %p436_p8 = scmp.lt.u32.totalorder %s428_s26, %s643_s21 }
  0x4a   : > { %p430_p10 = pnand %p429_p4, %p701_p9 }
  0x4b   : > { %p435_p5 = por %p434_p2, %p433_p1 }
  0x4c   : > { %p431_p12 = pneg %p430_p10 }
  0x4d   : > { %p437_p11 = por %p436_p8, %p435_p5 }
  0x4f   : > { %p438_p0 = pnand %p437_p11, %p431_p12 }
  0x51   : > { %441 = shalt.err (!%p438_p0)
}
  0x52   : > { %324 = dma.vmem_to_hbm [thread:$0]  (%p701_p9), %s638_s4, 128, %s643_s21, %s201_s18  }
  0x53 PF: > { %s227_s30 = sand.u32 1, %s476_s9   ;;  %p702_p7 = scmp.ne.s32.totalorder %s697_s24, 0 }
  0x54   : > { %p703_p13 = scmp.ge.s32.totalorder %s496_s14, 2  ;;  %s228_s5 = scalar_lea.sflag [#allocation4], %s227_s30 }
  0x56   : > { %p331_p3 = pnand %p703_p13, %p702_p7 }
  0x58   : > { %471 = dma.done.wait (!%p331_p3), %s228_s5, 128  }
  0x59   : > { %473 = vsyncadd (!%p331_p3), %s228_s5, 4294967168  ;;  %s18_s14 = sadd.s32 1, %s496_s14   ;;  %s704_s9 = smov %s480_s10 }
  0x5a   : > { %p15_p6 = scmp.ge.s32.totalorder %s18_s14, 4   ;;  %s705_s10 = smov %s484_s11 }
  0x5b   : > { %s706_s11 = smov %s571_s23  ;;  %s707_s12 = smov %s492_s13 }
  0x5c   : > { %s708_s13 = smov %s710_s17  ;;  %17 = sbr.rel (!%p15_p6) target bundleno = 6 (0x6), region = 76 }
  0x63   :  { %233 = vsyncpa [#allocation3], 1 }
  0x64   :  { %235 = vsyncpa [#allocation3 + $0x1], 1 }
  0x65   :  { %236 = vsyncpa [#allocation4], 1 }
  0x66   :  { %238 = vsyncpa [#allocation4 + $0x1], 1 }

</bundles_post_ra>
